<compile_context>
chip_gen: v6e
topology: v6e:2x2x1
jax: 0.10.0
libtpu: 0.0.40
codegen_flags: <defaults>
</compile_context>

<pallas_src>
import functools

import jax
import jax.numpy as jnp
from jax.experimental import pallas as pl
from jax.experimental.pallas import tpu as pltpu


# --------------------------------------------------------------------------
# Pallas kernel: one grid step = (dst node type, dst-row tile). The relation
# loop (R <= R_max, small) is fully unrolled inside the step so the LLO
# scheduler interleaves the per-relation matmuls; no scratch accumulator.
# --------------------------------------------------------------------------
def hetero_gnn_kernel(src_ref, We_ref, be_ref, A_ref, xdst_ref,
                      Wself_ref, bself_ref, bneigh_ref, o_ref, *, n_rel):
    x = xdst_ref[0]                                          # (TILE_N, F_pad)
    # fc_self(x) + b_self + b_neigh  (W_neigh/b_neigh folded on the host)
    acc = (jnp.dot(x, Wself_ref[...], preferred_element_type=jnp.float32)
           + bself_ref[...] + bneigh_ref[...])
    # relation reduction, statically unrolled
    for r in range(n_rel):
        wh = (jnp.dot(src_ref[0, r], We_ref[0, r],
                      preferred_element_type=jnp.float32)
              + be_ref[0, r])                                # (N_src_pad, F_pad)
        # A is already scaled by 1/deg (mean aggregation folded in)
        acc = acc + jnp.dot(A_ref[0, r], wh,
                            preferred_element_type=jnp.float32)
    # residual: h_self + (fc_self(h_self) + fc_neigh(h_neigh))
    o_ref[0] = (x.astype(jnp.float32) + acc).astype(o_ref.dtype)


def _round_up(x, m):
    return (x + m - 1) // m * m


def _pad_to(x, shape):
    return jnp.pad(x, [(0, s - d) for d, s in zip(x.shape, shape)])


def hetero_gnn_layer(feat_dict, graph, params, *, compute_dtype=jnp.float32):
    """One HeteroGNNLayer forward (mean aggregation, relation-sum reducer).

    feat_dict: dict ntype -> [n_nodes, in_size] float32
    graph:     dict dst_ntype -> list of (src_ntype, etype, adj[n_dst, n_src])
    params:    W_trans/b_trans per etype, W_self/b_self, W_neigh/b_neigh
               (torch nn.Linear layout: W is [out, in]).
    """
    dst_types = list(graph.keys())
    T = len(dst_types)
    R_max = max(len(rels) for rels in graph.values())
    out_size, in_size = params["W_self"].shape
    assert in_size == out_size, "residual path requires in_size == out_size"

    F_pad = _round_up(max(in_size, out_size), 128)        # lane-dense features
    n_max = max(v.shape[0] for v in feat_dict.values())
    N_pad = _round_up(n_max, 8)                           # sublane-aligned rows
    TILE_N = N_pad if N_pad <= 256 else 256               # dst-row tile
    N_pad = _round_up(N_pad, TILE_N)
    n_dst_tiles = N_pad // TILE_N

    WneighT = params["W_neigh"].T                         # [out, out]
    zsrc = jnp.zeros((N_pad, F_pad), jnp.float32)
    zW = jnp.zeros((F_pad, F_pad), jnp.float32)
    zb = jnp.zeros((1, F_pad), jnp.float32)
    zA = jnp.zeros((N_pad, N_pad), jnp.float32)

    src_all, We_all, be_all, A_all, x_all = [], [], [], [], []
    for dst in dst_types:
        s_l, W_l, b_l, A_l = [], [], [], []
        for (s, e, A) in graph[dst]:
            s_l.append(_pad_to(feat_dict[s].astype(jnp.float32), (N_pad, F_pad)))
            # fold fc_neigh into the per-relation transform
            W_l.append(_pad_to(params["W_trans"][e].T @ WneighT, (F_pad, F_pad)))
            b_l.append(_pad_to((params["b_trans"][e] @ WneighT)[None, :],
                               (1, F_pad)))
            Af = A.astype(jnp.float32)
            deg = Af.sum(axis=-1, keepdims=True)
            invdeg = jnp.where(deg > 0, 1.0 / jnp.maximum(deg, 1.0), 0.0)
            A_l.append(_pad_to(Af * invdeg, (N_pad, N_pad)))   # mean folded into A
        for _ in range(R_max - len(graph[dst])):               # pad missing slots
            s_l.append(zsrc); W_l.append(zW); b_l.append(zb); A_l.append(zA)
        src_all.append(jnp.stack(s_l)); We_all.append(jnp.stack(W_l))
        be_all.append(jnp.stack(b_l)); A_all.append(jnp.stack(A_l))
        x_all.append(_pad_to(feat_dict[dst].astype(jnp.float32), (N_pad, F_pad)))

    src_all = jnp.stack(src_all).astype(compute_dtype)     # [T, R, N_pad, F_pad]
    We_all = jnp.stack(We_all).astype(compute_dtype)       # [T, R, F_pad, F_pad]
    be_all = jnp.stack(be_all)                             # [T, R, 1, F_pad] f32
    A_all = jnp.stack(A_all).astype(compute_dtype)         # [T, R, N_pad, N_pad]
    x_all = jnp.stack(x_all).astype(compute_dtype)         # [T, N_pad, F_pad]
    W_self = _pad_to(params["W_self"].T, (F_pad, F_pad)).astype(compute_dtype)
    b_self = _pad_to(params["b_self"][None, :], (1, F_pad))
    b_neigh = _pad_to(params["b_neigh"][None, :], (1, F_pad))

    flops = T * n_dst_tiles * (
        2 * TILE_N * F_pad * F_pad
        + R_max * (2 * N_pad * F_pad * F_pad + 2 * TILE_N * N_pad * F_pad))
    operands = (src_all, We_all, be_all, A_all, x_all, W_self, b_self, b_neigh)
    bytes_accessed = (sum(int(a.size) * a.dtype.itemsize for a in operands)
                      + T * N_pad * F_pad * 4)

    grid_spec = pltpu.PrefetchScalarGridSpec(
        num_scalar_prefetch=0,
        grid=(T, n_dst_tiles),
        in_specs=[
            pl.BlockSpec((1, R_max, N_pad, F_pad), lambda t, d: (t, 0, 0, 0)),
            pl.BlockSpec((1, R_max, F_pad, F_pad), lambda t, d: (t, 0, 0, 0)),
            pl.BlockSpec((1, R_max, 1, F_pad), lambda t, d: (t, 0, 0, 0)),
            pl.BlockSpec((1, R_max, TILE_N, N_pad), lambda t, d: (t, 0, d, 0)),
            pl.BlockSpec((1, TILE_N, F_pad), lambda t, d: (t, d, 0)),
            pl.BlockSpec((F_pad, F_pad), lambda t, d: (0, 0)),
            pl.BlockSpec((1, F_pad), lambda t, d: (0, 0)),
            pl.BlockSpec((1, F_pad), lambda t, d: (0, 0)),
        ],
        out_specs=pl.BlockSpec((1, TILE_N, F_pad), lambda t, d: (t, d, 0)),
    )

    out = pl.pallas_call(
        functools.partial(hetero_gnn_kernel, n_rel=R_max),
        out_shape=jax.ShapeDtypeStruct((T, N_pad, F_pad), jnp.float32),
        grid_spec=grid_spec,
        compiler_params=pltpu.CompilerParams(
            dimension_semantics=("parallel", "parallel")),
        cost_estimate=pl.CostEstimate(
            flops=flops, transcendentals=0, bytes_accessed=bytes_accessed),
    )(src_all, We_all, be_all, A_all, x_all, W_self, b_self, b_neigh)

    return {dst: out[t, :feat_dict[dst].shape[0], :out_size]
            for t, dst in enumerate(dst_types)}


def _leaky_relu(x, negative_slope=0.01):
    return jnp.where(x >= 0, x, negative_slope * x)


def hetero_gnn_model(feat_dict, graph, layer_params, return_ntype, *,
                     compute_dtype=jnp.float32):
    """Model.forward: n-layer HeteroGNN + leaky_relu, returns one node type."""
    h = feat_dict
    for params in layer_params:
        h = hetero_gnn_layer(h, graph, params, compute_dtype=compute_dtype)
        h = {k: _leaky_relu(v) for k, v in h.items()}
    return h[return_ntype]


# --------------------------------------------------------------------------
# Pure-JAX reference (un-folded, mirrors the torch forward exactly)
# --------------------------------------------------------------------------
def ref_layer(feat_dict, graph, params):
    rst = {}
    for dst, rels in graph.items():
        out_size = params["W_self"].shape[0]
        h_neigh = jnp.zeros((feat_dict[dst].shape[0], out_size), jnp.float32)
        for (s, e, A) in rels:
            wh = feat_dict[s] @ params["W_trans"][e].T + params["b_trans"][e]
            Af = A.astype(jnp.float32)
            deg = Af.sum(axis=-1, keepdims=True)
            invdeg = jnp.where(deg > 0, 1.0 / jnp.maximum(deg, 1.0), 0.0)
            h_neigh = h_neigh + (Af @ wh) * invdeg
        out = (feat_dict[dst] @ params["W_self"].T + params["b_self"]
               + h_neigh @ params["W_neigh"].T + params["b_neigh"])
        rst[dst] = feat_dict[dst] + out
    return rst


def ref_model(feat_dict, graph, layer_params, return_ntype):
    h = feat_dict
    for params in layer_params:
        h = ref_layer(h, graph, params)
        h = {k: _leaky_relu(v) for k, v in h.items()}
    return h[return_ntype]


# --------------------------------------------------------------------------
# Deterministic parameter / input construction
# --------------------------------------------------------------------------
def xavier_uniform(key, shape, gain):
    fan_out, fan_in = shape
    bound = gain * (6.0 / (fan_in + fan_out)) ** 0.5
    return jax.random.uniform(key, shape, jnp.float32, -bound, bound)


def linear_bias(key, fan_in, out):
    bound = 1.0 / (fan_in ** 0.5)
    return jax.random.uniform(key, (out,), jnp.float32, -bound, bound)


if __name__ == "__main__":
    # The residual inside HeteroGNNLayer requires in == hidden == out.
    IN_SIZE = 32
    N_PAPER, N_AUTHOR = 16, 8
    GAIN = 2.0 ** 0.5            # nn.init.calculate_gain('relu')

    etypes = ["cites", "writes", "written_by"]
    keys = iter(jax.random.split(jax.random.PRNGKey(0), 32))

    def make_layer_params():
        return {
            "W_trans": {e: xavier_uniform(next(keys), (IN_SIZE, IN_SIZE), GAIN)
                        for e in etypes},
            "b_trans": {e: linear_bias(next(keys), IN_SIZE, IN_SIZE)
                        for e in etypes},
            "W_self": xavier_uniform(next(keys), (IN_SIZE, IN_SIZE), GAIN),
            "b_self": linear_bias(next(keys), IN_SIZE, IN_SIZE),
            "W_neigh": xavier_uniform(next(keys), (IN_SIZE, IN_SIZE), GAIN),
            "b_neigh": linear_bias(next(keys), IN_SIZE, IN_SIZE),
        }

    layer_params = [make_layer_params(), make_layer_params()]   # n_layers = 2

    feat_dict = {   # Model.embed: xavier-initialized node embeddings
        "paper": xavier_uniform(next(keys), (N_PAPER, IN_SIZE), 1.0),
        "author": xavier_uniform(next(keys), (N_AUTHOR, IN_SIZE), 1.0),
    }

    # dense per-relation adjacencies, [n_dst, n_src]
    A_cites = jax.random.bernoulli(next(keys), 0.3,
                                   (N_PAPER, N_PAPER)).astype(jnp.float32)
    A_writes = jax.random.bernoulli(next(keys), 0.4,
                                    (N_PAPER, N_AUTHOR)).astype(jnp.float32)
    graph = {
        "paper": [("paper", "cites", A_cites), ("author", "writes", A_writes)],
        "author": [("paper", "written_by", A_writes.T)],
    }

    # Full Model forward: 2 layers + leaky_relu, returns h['paper'].
    out = jax.block_until_ready(
        hetero_gnn_model(feat_dict, graph, layer_params, "paper"))
    ref = ref_model(feat_dict, graph, layer_params, "paper")
    assert out.shape == (N_PAPER, IN_SIZE)
    assert jnp.allclose(out, ref, atol=1e-3, rtol=1e-3)

    # Single HeteroGNNLayer, all node types.
    layer_out = hetero_gnn_layer(feat_dict, graph, layer_params[0])
    layer_ref = ref_layer(feat_dict, graph, layer_params[0])
    for k in layer_out:
        v = jax.block_until_ready(layer_out[k])
        assert v.shape == layer_ref[k].shape
        assert jnp.allclose(v, layer_ref[k], atol=1e-3, rtol=1e-3), k

    # Optional bf16 compute-dtype path (half the DMA bytes, 2x MXU rate at
    # scale); checked against an output-scale-relative bound.
    out_bf16 = jax.block_until_ready(
        hetero_gnn_layer(feat_dict, graph, layer_params[0],
                         compute_dtype=jnp.bfloat16)["paper"])
    scale = float(jnp.max(jnp.abs(layer_ref["paper"])))
    assert float(jnp.max(jnp.abs(out_bf16 - layer_ref["paper"]))) < 0.1 * scale

    print("KERNEL_OK")
</pallas_src>

<mosaic_0001>
module attributes {stable_mosaic.version = 11 : i64} {
  func.func @hetero_gnn_kernel(%arg0: i32, %arg1: i32, %arg2: memref<1x2x16x128xf32, #tpu.memory_space<vmem>>, %arg3: memref<1x2x128x128xf32, #tpu.memory_space<vmem>>, %arg4: memref<1x2x1x128xf32, #tpu.memory_space<vmem>>, %arg5: memref<1x2x16x16xf32, #tpu.memory_space<vmem>>, %arg6: memref<1x16x128xf32, #tpu.memory_space<vmem>>, %arg7: memref<128x128xf32, #tpu.memory_space<vmem>>, %arg8: memref<1x128xf32, #tpu.memory_space<vmem>>, %arg9: memref<1x128xf32, #tpu.memory_space<vmem>>, %arg10: memref<1x16x128xf32, #tpu.memory_space<vmem>>) attributes {dimension_semantics = [#tpu.dimension_semantics<parallel>, #tpu.dimension_semantics<parallel>], iteration_bounds = array<i64: 2, 1>, scalar_prefetch = 0 : i64, scratch_operands = 0 : i64, tpu.core_type = #tpu.core_type<tc>, window_params = [{transform_indices = @transform_0, window_bounds = array<i64: 1, 2, 16, 128>}, {transform_indices = @transform_1, window_bounds = array<i64: 1, 2, 128, 128>}, {transform_indices = @transform_2, window_bounds = array<i64: 1, 2, 1, 128>}, {transform_indices = @transform_3, window_bounds = array<i64: 1, 2, 16, 16>}, {transform_indices = @transform_4, window_bounds = array<i64: 1, 16, 128>}, {pipeline_mode = #tpu.pipeline_mode<synchronous>, transform_indices = @transform_5, window_bounds = array<i64: 128, 128>}, {pipeline_mode = #tpu.pipeline_mode<synchronous>, transform_indices = @transform_6, window_bounds = array<i64: 1, 128>}, {pipeline_mode = #tpu.pipeline_mode<synchronous>, transform_indices = @transform_7, window_bounds = array<i64: 1, 128>}, {transform_indices = @transform_8, window_bounds = array<i64: 1, 16, 128>}]} {
    %c0 = arith.constant 0 : index
    %c0_0 = arith.constant 0 : index
    %c0_1 = arith.constant 0 : index
    %0 = vector.load %arg6[%c0, %c0_0, %c0_1] : memref<1x16x128xf32, #tpu.memory_space<vmem>>, vector<1x16x128xf32>
    %1 = vector.shape_cast %0 : vector<1x16x128xf32> to vector<16x128xf32>
    %c0_2 = arith.constant 0 : index
    %c0_3 = arith.constant 0 : index
    %2 = vector.load %arg7[%c0_2, %c0_3] : memref<128x128xf32, #tpu.memory_space<vmem>>, vector<128x128xf32>
    %cst = arith.constant dense<0.000000e+00> : vector<16x128xf32>
    %3 = tpu.matmul %1, %2, %cst {dimension_numbers = #tpu.dot_dimension_numbers<[1], [0], [0], [1], [0, 0, 1, 1], [], []>} : vector<16x128xf32>, vector<128x128xf32>, vector<16x128xf32> -> vector<16x128xf32>
    %c0_4 = arith.constant 0 : index
    %c0_5 = arith.constant 0 : index
    %4 = vector.load %arg8[%c0_4, %c0_5] : memref<1x128xf32, #tpu.memory_space<vmem>>, vector<1x128xf32>
    %5 = vector.broadcast %4 : vector<1x128xf32> to vector<16x128xf32>
    %6 = arith.addf %3, %5 : vector<16x128xf32>
    %c0_6 = arith.constant 0 : index
    %c0_7 = arith.constant 0 : index
    %7 = vector.load %arg9[%c0_6, %c0_7] : memref<1x128xf32, #tpu.memory_space<vmem>>, vector<1x128xf32>
    %8 = vector.broadcast %7 : vector<1x128xf32> to vector<16x128xf32>
    %9 = arith.addf %6, %8 : vector<16x128xf32>
    %c0_8 = arith.constant 0 : index
    %c0_9 = arith.constant 0 : index
    %c0_10 = arith.constant 0 : index
    %c0_11 = arith.constant 0 : index
    %10 = vector.load %arg2[%c0_8, %c0_9, %c0_10, %c0_11] : memref<1x2x16x128xf32, #tpu.memory_space<vmem>>, vector<1x1x16x128xf32>
    %11 = vector.shape_cast %10 : vector<1x1x16x128xf32> to vector<16x128xf32>
    %c0_12 = arith.constant 0 : index
    %c0_13 = arith.constant 0 : index
    %c0_14 = arith.constant 0 : index
    %c0_15 = arith.constant 0 : index
    %12 = vector.load %arg3[%c0_12, %c0_13, %c0_14, %c0_15] : memref<1x2x128x128xf32, #tpu.memory_space<vmem>>, vector<1x1x128x128xf32>
    %13 = vector.shape_cast %12 : vector<1x1x128x128xf32> to vector<128x128xf32>
    %cst_16 = arith.constant dense<0.000000e+00> : vector<16x128xf32>
    %14 = tpu.matmul %11, %13, %cst_16 {dimension_numbers = #tpu.dot_dimension_numbers<[1], [0], [0], [1], [0, 0, 1, 1], [], []>} : vector<16x128xf32>, vector<128x128xf32>, vector<16x128xf32> -> vector<16x128xf32>
    %c0_17 = arith.constant 0 : index
    %c0_18 = arith.constant 0 : index
    %c0_19 = arith.constant 0 : index
    %c0_20 = arith.constant 0 : index
    %15 = vector.load %arg4[%c0_17, %c0_18, %c0_19, %c0_20] : memref<1x2x1x128xf32, #tpu.memory_space<vmem>>, vector<1x1x1x128xf32>
    %16 = vector.shape_cast %15 : vector<1x1x1x128xf32> to vector<1x128xf32>
    %17 = vector.broadcast %16 : vector<1x128xf32> to vector<16x128xf32>
    %18 = arith.addf %14, %17 : vector<16x128xf32>
    %c0_21 = arith.constant 0 : index
    %c0_22 = arith.constant 0 : index
    %c0_23 = arith.constant 0 : index
    %c0_24 = arith.constant 0 : index
    %19 = vector.load %arg5[%c0_21, %c0_22, %c0_23, %c0_24] : memref<1x2x16x16xf32, #tpu.memory_space<vmem>>, vector<1x1x16x16xf32>
    %20 = vector.shape_cast %19 : vector<1x1x16x16xf32> to vector<16x16xf32>
    %cst_25 = arith.constant dense<0.000000e+00> : vector<16x128xf32>
    %21 = tpu.matmul %20, %18, %cst_25 {dimension_numbers = #tpu.dot_dimension_numbers<[1], [0], [0], [1], [0, 0, 1, 1], [], []>} : vector<16x16xf32>, vector<16x128xf32>, vector<16x128xf32> -> vector<16x128xf32>
    %22 = arith.addf %9, %21 : vector<16x128xf32>
    %c0_26 = arith.constant 0 : index
    %c1 = arith.constant 1 : index
    %c0_27 = arith.constant 0 : index
    %c0_28 = arith.constant 0 : index
    %23 = vector.load %arg2[%c0_26, %c1, %c0_27, %c0_28] : memref<1x2x16x128xf32, #tpu.memory_space<vmem>>, vector<1x1x16x128xf32>
    %24 = vector.shape_cast %23 : vector<1x1x16x128xf32> to vector<16x128xf32>
    %c0_29 = arith.constant 0 : index
    %c1_30 = arith.constant 1 : index
    %c0_31 = arith.constant 0 : index
    %c0_32 = arith.constant 0 : index
    %25 = vector.load %arg3[%c0_29, %c1_30, %c0_31, %c0_32] : memref<1x2x128x128xf32, #tpu.memory_space<vmem>>, vector<1x1x128x128xf32>
    %26 = vector.shape_cast %25 : vector<1x1x128x128xf32> to vector<128x128xf32>
    %cst_33 = arith.constant dense<0.000000e+00> : vector<16x128xf32>
    %27 = tpu.matmul %24, %26, %cst_33 {dimension_numbers = #tpu.dot_dimension_numbers<[1], [0], [0], [1], [0, 0, 1, 1], [], []>} : vector<16x128xf32>, vector<128x128xf32>, vector<16x128xf32> -> vector<16x128xf32>
    %c0_34 = arith.constant 0 : index
    %c1_35 = arith.constant 1 : index
    %c0_36 = arith.constant 0 : index
    %c0_37 = arith.constant 0 : index
    %28 = vector.load %arg4[%c0_34, %c1_35, %c0_36, %c0_37] : memref<1x2x1x128xf32, #tpu.memory_space<vmem>>, vector<1x1x1x128xf32>
    %29 = vector.shape_cast %28 : vector<1x1x1x128xf32> to vector<1x128xf32>
    %30 = vector.broadcast %29 : vector<1x128xf32> to vector<16x128xf32>
    %31 = arith.addf %27, %30 : vector<16x128xf32>
    %c0_38 = arith.constant 0 : index
    %c1_39 = arith.constant 1 : index
    %c0_40 = arith.constant 0 : index
    %c0_41 = arith.constant 0 : index
    %32 = vector.load %arg5[%c0_38, %c1_39, %c0_40, %c0_41] : memref<1x2x16x16xf32, #tpu.memory_space<vmem>>, vector<1x1x16x16xf32>
    %33 = vector.shape_cast %32 : vector<1x1x16x16xf32> to vector<16x16xf32>
    %cst_42 = arith.constant dense<0.000000e+00> : vector<16x128xf32>
    %34 = tpu.matmul %33, %31, %cst_42 {dimension_numbers = #tpu.dot_dimension_numbers<[1], [0], [0], [1], [0, 0, 1, 1], [], []>} : vector<16x16xf32>, vector<16x128xf32>, vector<16x128xf32> -> vector<16x128xf32>
    %35 = arith.addf %22, %34 : vector<16x128xf32>
    %36 = arith.addf %1, %35 : vector<16x128xf32>
    %c0_43 = arith.constant 0 : index
    %c0_44 = arith.constant 0 : index
    %c0_45 = arith.constant 0 : index
    %37 = vector.load %arg10[%c0_43, %c0_44, %c0_45] : memref<1x16x128xf32, #tpu.memory_space<vmem>>, vector<1x16x128xf32>
    %38 = vector.shape_cast %37 : vector<1x16x128xf32> to vector<16x128xf32>
    %39 = vector.shape_cast %36 : vector<16x128xf32> to vector<1x16x128xf32>
    tpu.vector_store %arg10[%c0_43, %c0_44, %c0_45], %39 {strides = array<i32>} : memref<1x16x128xf32, #tpu.memory_space<vmem>>, vector<1x16x128xf32>,
    return
  }
  func.func @transform_0(%arg0: i32, %arg1: i32) -> (i32, i32, i32, i32) {
    %c0_i32 = arith.constant 0 : i32
    %c0_i32_0 = arith.constant 0 : i32
    %c0_i32_1 = arith.constant 0 : i32
    %c0_i32_2 = arith.constant 0 : i32
    return %arg0, %c0_i32, %c0_i32_0, %c0_i32_1 : i32, i32, i32, i32
  }
  func.func @transform_1(%arg0: i32, %arg1: i32) -> (i32, i32, i32, i32) {
    %c0_i32 = arith.constant 0 : i32
    %c0_i32_0 = arith.constant 0 : i32
    %c0_i32_1 = arith.constant 0 : i32
    %c0_i32_2 = arith.constant 0 : i32
    return %arg0, %c0_i32, %c0_i32_0, %c0_i32_1 : i32, i32, i32, i32
  }
  func.func @transform_2(%arg0: i32, %arg1: i32) -> (i32, i32, i32, i32) {
    %c0_i32 = arith.constant 0 : i32
    %c0_i32_0 = arith.constant 0 : i32
    %c0_i32_1 = arith.constant 0 : i32
    %c0_i32_2 = arith.constant 0 : i32
    return %arg0, %c0_i32, %c0_i32_0, %c0_i32_1 : i32, i32, i32, i32
  }
  func.func @transform_3(%arg0: i32, %arg1: i32) -> (i32, i32, i32, i32) {
    %c0_i32 = arith.constant 0 : i32
    %c0_i32_0 = arith.constant 0 : i32
    %c0_i32_1 = arith.constant 0 : i32
    return %arg0, %c0_i32, %arg1, %c0_i32_0 : i32, i32, i32, i32
  }
  func.func @transform_4(%arg0: i32, %arg1: i32) -> (i32, i32, i32) {
    %c0_i32 = arith.constant 0 : i32
    %c0_i32_0 = arith.constant 0 : i32
    return %arg0, %arg1, %c0_i32 : i32, i32, i32
  }
  func.func @transform_5(%arg0: i32, %arg1: i32) -> (i32, i32) {
    %c0_i32 = arith.constant 0 : i32
    %c0_i32_0 = arith.constant 0 : i32
    %c0_i32_1 = arith.constant 0 : i32
    return %c0_i32, %c0_i32_0 : i32, i32
  }
  func.func @transform_6(%arg0: i32, %arg1: i32) -> (i32, i32) {
    %c0_i32 = arith.constant 0 : i32
    %c0_i32_0 = arith.constant 0 : i32
    %c0_i32_1 = arith.constant 0 : i32
    return %c0_i32, %c0_i32_0 : i32, i32
  }
  func.func @transform_7(%arg0: i32, %arg1: i32) -> (i32, i32) {
    %c0_i32 = arith.constant 0 : i32
    %c0_i32_0 = arith.constant 0 : i32
    %c0_i32_1 = arith.constant 0 : i32
    return %c0_i32, %c0_i32_0 : i32, i32
  }
  func.func @transform_8(%arg0: i32, %arg1: i32) -> (i32, i32, i32) {
    %c0_i32 = arith.constant 0 : i32
    %c0_i32_0 = arith.constant 0 : i32
    return %arg0, %arg1, %c0_i32 : i32, i32, i32
  }
}

</mosaic_0001>

<bundles_post_ra>
// kernel: tpu_custom_call.1
= control target key start
LH: loop header
LB: loop body
LE: loop exit
PB: predicated region body
PF: predicated region fallthrough
CT: control target
= control target key end

     0   :  { %s2218_s0 = inlined_call_operand.hbm [shape: f32[2,2,16,128], index: 0, kind: input, shape index: {}]   ;;  %s2219_s1 = inlined_call_operand.hbm [shape: f32[2,2,128,128], index: 1, kind: input, shape index: {}]   ;;  %s2220_s2 = inlined_call_operand.hbm [shape: f32[2,2,1,128], index: 2, kind: input, shape index: {}]   ;;  %s2221_s3 = inlined_call_operand.hbm [shape: f32[2,2,16,16], index: 3, kind: input, shape index: {}]   ;;  %s2222_s4 = inlined_call_operand.hbm [shape: f32[2,16,128], index: 4, kind: input, shape index: {}]   ;;  %s2223_s5 = inlined_call_operand.hbm [shape: f32[128,128], index: 5, kind: input, shape index: {}]   ;;  %s2224_s6 = inlined_call_operand.vmem [shape: f32[1,128], index: 6, kind: input, shape index: {}]   ;;  %s2225_s7 = inlined_call_operand.vmem [shape: f32[1,128], index: 7, kind: input, shape index: {}]   ;;  %s2226_s8 = inlined_call_operand.hbm [shape: f32[2,16,128], index: 8, kind: output, shape index: {}]  }
   0x1   :  { %2241 = sst [smem:[#allocation25_spill]] %s2218_s0 }
   0x2   :  { %2242 = sst [smem:[#allocation26_spill]] %s2219_s1 }
   0x3   :  { %2243 = sst [smem:[#allocation27_spill]] %s2220_s2 }
   0x4   :  { %2244 = sst [smem:[#allocation28_spill]] %s2221_s3 }
   0x5   :  { %2245 = sst [smem:[#allocation29_spill]] %s2223_s5 }
   0x6   :  { %2246 = sst [smem:[#allocation30_spill]] %s2225_s7 }
   0x7   :  { %2247 = sst [smem:[#allocation31_spill]] %s2226_s8 }
   0x8   :  { %13 = vsyncpa [#allocation3], 0 }
   0x9   :  { %15 = vsyncpa [#allocation3 + $0x1], 0 }
   0xa   :  { %16 = vsyncpa [#allocation6], 0 }
   0xb   :  { %18 = vsyncpa [#allocation6 + $0x1], 0 }
   0xc   :  { %19 = vsyncpa [#allocation9], 0 }
   0xd   :  { %21 = vsyncpa [#allocation9 + $0x1], 0 }
   0xe   :  { %22 = vsyncpa [#allocation12], 0 }
   0xf   :  { %23 = vsyncpa [#allocation4], 0 }
  0x10   :  { %25 = vsyncpa [#allocation4 + $0x1], 0  ;;  %s1874_s27 = smov 0   ;;  %s1876_s28 = smov 0  }
  0x11   :  { %s1878_s29 = smov 0   ;;  %s1880_s30 = smov 0  }
  0x12   :  { %s1882_s9 = smov 0   ;;  %s1884_s10 = smov 0  }
  0x13 LB: > { %2248 = sst [smem:[#allocation19_spill]] %s1794_s27  ;;  %s43_s11 = sadd.s32 1, %s1810_s9  ;;  %s1814_s10 = sphi %s1884_s10, %s31_s10   ;;  %s1810_s9 = sphi %s1882_s9, %s2286_s9   ;;  %s1806_s30 = sphi %s1880_s30, %s2285_s30   ;;  %s1802_s29 = sphi %s1878_s29, %s2281_s29   ;;  %s1798_s28 = sphi %s1876_s28, %s2284_s28   ;;  %s1794_s27 = sphi %s1874_s27, %s2283_s27  }
  0x14   : > { %2249 = sst [smem:[#allocation20_spill]] %s1802_s29  ;;  %s50_s12 = sadd.s32 1, %s1802_s29 }
  0x15   : > { %2250 = sst [smem:[#allocation21_spill]] %s1814_s10  ;;  %p45_p0 = scmp.ge.s32.totalorder %s43_s11, 2 }
  0x16   : > { %p57_p1 = scmp.ne.s32.totalorder %s1802_s29, %s1798_s28  ;;  %p58_p2 = scmp.eq.s32.totalorder %s1814_s10, 0 }
  0x17   : > { %s2288_s11 = smov (%p45_p0, %s43_s11), 0  ;;  %p1498_p6 = scmp.lt.s32.totalorder %s1814_s10, 2 }
  0x18   : > { %2251 = sst [smem:[#allocation22_spill]] %s2288_s11  ;;  %p59_p3 = por %p58_p2, %p57_p1 }
  0x19   : > { %s47_s13 = ssub.s32 %s1810_s9, %s2288_s11  ;;  %s1919_s14 = sand.u32 1, %s1802_s29  }
  0x1a   : > { %p48_p5 = scmp.eq.s32.totalorder %s47_s13, 0  ;;  %s2227_s15 = sand.u32 1, %s1814_s10  }
  0x1b   : > { %p1925_p7 = pnand %p1498_p6, %p59_p3  ;;  %s1216_s18 = sshll.u32 %s1919_s14, 8 }
  0x1c   : > { %s1923_s16 = scalar_select %p48_p5, %s1802_s29, %s50_s12  }
  0x1d   : > { %s1271_s19 = sshll.u32 %s1810_s9, 12  ;;  %s2254_s1 = sld [smem:[#allocation26_spill]] }
  0x1e   : > { %2252 = sst [smem:[#allocation23_spill]] %s1923_s16  ;;  %s330_s23 = scalar_lea.vmem [#allocation5], %s1216_s18 }
  0x1f   : > { %s337_s24 = sshll.u32 %s330_s23, 4  ;;  %s1213_s25 = sshll.u32 %s1919_s14, 5  ;;  %s338_s24 = int_to_ptr.vmem [resolvable:$true] %s337_s24 }
  0x20   : > { %s1937_s26 = scalar_lea.sflag [#allocation6], %s2227_s15  ;;  %p1941_p8 = pneg %p1925_p7 }
  0x21   : > { %s1569_s13 = scalar_lea.vmem %s338_s24, 4096  ;;  %s1816_s20 = smov [#allocation5]  }
  0x22   : > { %p1570_p9 = scmp.ne.s32.totalorder %s338_s24, %s1569_s13 }
  0x23   : > { %s336_s22 = scalar_lea.hbm %s2254_s1, %s1271_s19  ;;  %s1574_s19 = sshll.u32 %s1816_s20, 4  ;;  %s1575_s19 = int_to_ptr.vmem [resolvable:$false] %s1574_s19 }
  0x24   : > { %p1572_p10 = pnand %p1570_p9, %p1941_p8  ;;  %s1576_s18 = scalar_lea.vmem %s1575_s19, 8192 }
  0x25   : > { %p1577_p12 = scmp.lt.s32.totalorder %s338_s24, %s1575_s19  ;;  %p1578_p13 = scmp.lt.s32.totalorder %s1576_s18, %s1569_s13 }
  0x26   : > { %p1573_p11 = pneg %p1572_p10 }
  0x27   : > { %p1579_p0 = por %p1578_p13, %p1577_p12 }
  0x29   : > { %p1580_p2 = pnand %p1579_p0, %p1573_p11 }
  0x2b   : > { %1583 = shalt.err (!%p1580_p2)
}
  0x2c   : > { %s2230_s21 = smov 128   ;;  %s2232_s23 = smov 8  }
  0x2d   : > { %1483 = dma.hbm_to_vmem [thread:$0]  (!%p1925_p7), %s336_s22, 4096, %s338_s24, %s1937_s26, %s2230_s21, %s2230_s21, %s2232_s23  }
  0x2e   : > { %s1270_s20 = sshll.u32 %s1810_s9, 9  ;;  %s2256_s3 = sld [smem:[#allocation28_spill]] }
  0x2f   : > { %s372_s15 = scalar_lea.vmem [#allocation8], %s1213_s25  ;;  %s2257_s11 = sand.u32 1, %s1814_s10  }
  0x30   : > { %s381_s1 = sshll.u32 %s372_s15, 4  ;;  %s1963_s16 = scalar_lea.sflag [#allocation9], %s2257_s11  ;;  %s382_s1 = int_to_ptr.vmem [resolvable:$true] %s381_s1 }
  0x31   : > { %s1597_s8 = scalar_lea.vmem %s382_s1, 512  ;;  %s1819_s7 = smov [#allocation8]  }
  0x32   : > { %p1598_p3 = scmp.ne.s32.totalorder %s382_s1, %s1597_s8  ;;  %s1602_s22 = sshll.u32 %s1819_s7, 4  ;;  %s1603_s22 = int_to_ptr.vmem [resolvable:$false] %s1602_s22 }
  0x33   : > { %s1604_s24 = scalar_lea.vmem %s1603_s22, 1024  ;;  %p1605_p9 = scmp.lt.s32.totalorder %s382_s1, %s1603_s22 }
  0x34   : > { %s380_s18 = scalar_lea.hbm %s2256_s3, %s1270_s20  ;;  %p1600_p5 = pnand %p1598_p3, %p1941_p8 }
  0x35   : > { %p1606_p10 = scmp.lt.s32.totalorder %s1604_s24, %s1597_s8 }
  0x36   : > { %p1601_p6 = pneg %p1600_p5 }
  0x37   : > { %p1607_p11 = por %p1606_p10, %p1605_p9 }
  0x39   : > { %p1608_p12 = pnand %p1607_p11, %p1601_p6 }
  0x3b   : > { %1611 = shalt.err (!%p1608_p12)
}
  0x3c   : > { %1489 = dma.hbm_to_vmem [thread:$0]  (!%p1925_p7), %s380_s18, 512, %s382_s1, %s1963_s16, %s2230_s21, %s2230_s21, %s2232_s23  }
  0x3d   : > { %s1974_s7 = sadd.s32 4294967295, %s1814_s10   ;;  %s1209_s8 = sadd.s32 4294967294, %s1814_s10  }
  0x3e   : > { %p63_p13 = scmp.ne.s32.totalorder %s1798_s28, %s1794_s27  ;;  %p2240_p0 = scmp.eq.s32.totalorder %s1974_s7, 0 }
  0x3f   : > { %p260_p2 = scmp.eq.s32.totalorder %s1974_s7, 1  ;;  %p266_p3 = scmp.eq.s32.totalorder %s1209_s8, 1 }
  0x40   : > { %p1983_p5 = por %p2240_p0, %p63_p13  ;;  %p1210_p6 = scmp.ge.s32.totalorder %s1814_s10, 1 }
  0x41   : > { %p1991_p9 = por %p260_p2, %p57_p1  ;;  %p1995_p10 = por %p266_p3, %p63_p13 }
  0x42   : > { %p273_p11 = scmp.lt.s32.totalorder %s1814_s10, 3  ;;  %s1820_s19 = smov [#allocation11]  }
  0x43   : > { %s2259_s1 = scalar_select %p1991_p9, 1, 0 }
  0x44   : > { %s2260_s15 = scalar_select %p1995_p10, 1, 0 }
  0x45   : > { %p2000_p12 = pnand %p1210_p6, %p273_p11  ;;  %s285_s18 = sshll.u32 %s1820_s19, 4  ;;  %s2004_s18 = int_to_ptr.vmem [resolvable:$true] %s285_s18 }
  0x46   : > { %2261 = sst [smem:[#allocation24_spill]] %s2260_s15  ;;  %s309_s21 = scalar_lea.vmem [#allocation2], %s1213_s25 }
  0x47   : > { %p1473_p1 = pneg %p2000_p12  ;;  %s2263_s0 = sld [smem:[#allocation25_spill]] }
  0x48   : > { %s316_s23 = sshll.u32 %s309_s21, 4  ;;  %s1219_s3 = sshll.u32 %s1919_s14, 1  ;;  %s317_s23 = int_to_ptr.vmem [resolvable:$true] %s316_s23 }
  0x49   : > { %p2018_p13 = pnand %p1473_p1, %p2240_p0  ;;  %s306_s19 = scalar_lea.sflag [#allocation3], %s1919_s14 }
  0x4a   : > { %s1625_s10 = scalar_lea.vmem %s317_s23, 512  ;;  %s1821_s15 = smov [#allocation2]  }
  0x4b   : > { %p1626_p2 = scmp.ne.s32.totalorder %s317_s23, %s1625_s10  ;;  %s1630_s27 = sshll.u32 %s1821_s15, 4  ;;  %s1631_s27 = int_to_ptr.vmem [resolvable:$false] %s1630_s27 }
  0x4c   : > { %p1633_p11 = scmp.lt.s32.totalorder %s317_s23, %s1631_s27 }
  0x4d   : > { %s315_s8 = scalar_lea.hbm %s2263_s0, %s1270_s20  ;;  %p1628_p3 = pnand %p1626_p2, %p1941_p8 }
  0x4e   : > { %s1632_s20 = scalar_lea.vmem %s1631_s27, 1024 }
  0x4f   : > { %p1629_p6 = pneg %p1628_p3  ;;  %p1634_p4 = scmp.lt.s32.totalorder %s1632_s20, %s1625_s10 }
  0x51   : > { %p1635_p10 = por %p1634_p4, %p1633_p11 }
  0x53   : > { %p1636_p9 = pnand %p1635_p10, %p1629_p6 }
  0x55   : > { %1639 = shalt.err (!%p1636_p9)
}
  0x56   : > { %s2265_s25 = smov 8   ;;  %s2266_s21 = smov 128  }
  0x57   : > { %1480 = dma.hbm_to_vmem [thread:$0]  (!%p1925_p7), %s315_s8, 512, %s317_s23, %s306_s19, %s2266_s21, %s2266_s21, %s2265_s25  }
  0x58   : > { %p1642_p1 = pneg %p2018_p13  ;;  %s1651_s15 = scalar_lea.vmem %s2004_s18, 2048 }
  0x59   : > { %p1652_p2 = scmp.ne.s32.totalorder %s2004_s18, %s1651_s15  ;;  %p1659_p4 = scmp.lt.s32.totalorder %s2004_s18, %s2004_s18 }
  0x5a   : > { %p1660_p10 = scmp.lt.s32.totalorder %s1651_s15, %s1651_s15 }
  0x5b   : > { %p1654_p3 = pnand %p1652_p2, %p1642_p1 }
  0x5c   : > { %p1661_p9 = por %p1660_p10, %p1659_p4 }
  0x5d   : > { %p1655_p0 = pneg %p1654_p3 }
  0x5f   : > { %p1662_p6 = pnand %p1661_p9, %p1655_p0 }
  0x61   : > { %1665 = shalt.err (!%p1662_p6)
}
  0x62   : > { %s2267_s5 = sld [smem:[#allocation29_spill]]  ;;  %s1272_s23 = sshll.u32 %s1810_s9, 5 }
  0x63   : > { %s351_s22 = scalar_lea.vmem [#allocation7], %s1219_s3  ;;  %s2268_s2 = sld [smem:[#allocation27_spill]] }
  0x64   : > { %s358_s24 = sshll.u32 %s351_s22, 4  ;;  %s1822_s15 = smov [#allocation7]   ;;  %s359_s24 = int_to_ptr.vmem [resolvable:$true] %s358_s24 }
  0x65   : > { %s1679_s29 = scalar_lea.vmem %s359_s24, 32  ;;  %s1684_s27 = sshll.u32 %s1822_s15, 4  ;;  %s1685_s27 = int_to_ptr.vmem [resolvable:$false] %s1684_s27 }
  0x66   : > { %p1680_p0 = scmp.ne.s32.totalorder %s359_s24, %s1679_s29  ;;  %s1686_s10 = scalar_lea.vmem %s1685_s27, 64 }
  0x67   : > { %p1687_p2 = scmp.lt.s32.totalorder %s359_s24, %s1685_s27 }
  0x68   : > { %1476 = dma.hbm_to_vmem [thread:$0]  (!%p2018_p13), %s2267_s5, 2048, %s2004_s18, [#allocation12], %s2266_s21, %s2266_s21, %s2265_s25  }
  0x69   : > { %s357_s20 = scalar_lea.hbm %s2268_s2, %s1272_s23  ;;  %p1682_p11 = pnand %p1680_p0, %p1941_p8 }
  0x6a   : > { %p1688_p13 = scmp.lt.s32.totalorder %s1686_s10, %s1679_s29 }
  0x6b   : > { %p1683_p1 = pneg %p1682_p11 }
  0x6c   : > { %p1689_p3 = por %p1688_p13, %p1687_p2 }
  0x6e   : > { %p1690_p4 = pnand %p1689_p3, %p1683_p1 }
  0x70   : > { %1693 = shalt.err (!%p1690_p4)
}
  0x71   : > { %s1823_s3 = smov 16   ;;  %s1824_s18 = smov 1  }
  0x72   : > { %1486 = dma.hbm_to_vmem [thread:$0]  (!%p1925_p7), %s357_s20, 32, %s359_s24, %s1937_s26, %s1823_s3, %s1823_s3, %s1824_s18  }
  0x73   : > { %s1225_s23 = sshll.u32 %s1919_s14, 4  ;;  %s1274_s22 = sshll.u32 %s1810_s9, 8 }
  0x74   : > { %s403_s15 = scalar_lea.hbm %s2222_s4, %s1274_s22  ;;  %s395_s27 = scalar_lea.vmem [#allocation10], %s1225_s23 }
  0x75   : > { %s404_s29 = sshll.u32 %s395_s27, 4  ;;  %s1825_s0 = smov [#allocation10]   ;;  %s405_s29 = int_to_ptr.vmem [resolvable:$true] %s404_s29 }
  0x76   : > { %s1707_s10 = scalar_lea.vmem %s405_s29, 256  ;;  %s1712_s2 = sshll.u32 %s1825_s0, 4  ;;  %s1713_s2 = int_to_ptr.vmem [resolvable:$false] %s1712_s2 }
  0x77   : > { %p1708_p10 = scmp.ne.s32.totalorder %s405_s29, %s1707_s10  ;;  %s1714_s5 = scalar_lea.vmem %s1713_s2, 512 }
  0x78   : > { %p1715_p0 = scmp.lt.s32.totalorder %s405_s29, %s1713_s2  ;;  %p1716_p11 = scmp.lt.s32.totalorder %s1714_s5, %s1707_s10 }
  0x79   : > { %p1710_p9 = pnand %p1708_p10, %p1941_p8 }
  0x7a   : > { %p1717_p1 = por %p1716_p11, %p1715_p0 }
  0x7b   : > { %p1711_p6 = pneg %p1710_p9 }
  0x7d   : > { %p1718_p2 = pnand %p1717_p1, %p1711_p6 }
  0x7f   : > { %1721 = shalt.err (!%p1718_p2)
}
  0x80   : > { %1492 = dma.hbm_to_vmem [thread:$0]  (!%p1925_p7), %s403_s15, 256, %s405_s29, %s1963_s16, %s2266_s21, %s2266_s21, %s2265_s25  }
  0x81   : > { %416 = sbr.rel (%p2000_p12) target bundleno = 621 (0x26d), region = 52  ;;  %s2072_s0 = sand.u32 (!%p2000_p12), 1, %s1798_s28  }
  0x82   : > { %s1229_s2 = sshll.u32 (!%p2000_p12), %s2072_s0, 5  ;;  %s419_s5 = scalar_lea.sflag (!%p2000_p12), [#allocation3], %s2072_s0 }
  0x83   : > { %s2076_s14 = scalar_lea.vmem (!%p2000_p12), [#allocation2], %s1229_s2 }
  0x86   : > { %1773 = dma.done.wait (%p1983_p5), %s419_s5, 512  }
  0x87   : > { %1775 = vsyncadd (%p1983_p5), %s419_s5, 4294966784  ;;  %s427_s16 = sand.u32 1, %s1974_s7   ;;  %s1230_s17 = sshll.u32 %s2072_s0, 8 }
  0x88   : > { %s428_s26 = scalar_lea.sflag [#allocation6], %s427_s16  ;;  %s2084_s12 = scalar_lea.vmem [#allocation5], %s1230_s17 }
  0x89   : > { %1777 = dma.done.wait (%p1983_p5), %s428_s26, 4128  }
  0x8a   : > { %1779 = vsyncadd (%p1983_p5), %s428_s26, 4294963168  ;;  %s1231_s13 = sshll.u32 %s2072_s0, 1  ;;  %s446_s21 = scalar_lea.sflag [#allocation9], %s427_s16 }
  0x8b   : > { %s2091_s25 = scalar_lea.vmem [#allocation7], %s1231_s13  ;;  %s2093_s24 = scalar_lea.vmem [#allocation8], %s1229_s2 }
  0x8c   : > { %1781 = dma.done.wait (%p1983_p5), %s446_s21, 768  }
  0x8d   : > { %1783 = vsyncadd (%p1983_p5), %s446_s21, 4294966528  ;;  %s1233_s20 = sshll.u32 %s2072_s0, 4  ;;  %p2269_p7 = scmp.eq.s32.totalorder %s1974_s7, 0 }
  0x8e   : > { %s2102_s3 = scalar_lea.vmem [#allocation10], %s1233_s20 }
  0x8f   : > { %1785 = dma.done.wait (%p2269_p7), [#allocation12], 2048   ;;  %p2270_p8 = pmov %p2269_p7 }
  0x90   : > { %v644_v0 = vld [vmem:[%s2084_s12 + $0x78] sm:$0xff]  ;;  %v643_v1 = vld [vmem:[%s2084_s12 + $0x70] sm:$0xff]  ;;  %v642_v2 = vld [vmem:[%s2084_s12 + $0x68] sm:$0xff]  ;;  %vm729_vm0 = vcmask 130048   ;;  %s2271_s22 = sld [smem:[#allocation30_spill]]  ;;  %s514_s8 = scalar_lea.vmem [#allocation13], %s1233_s20 }
  0x91   : > { %1787 = vsyncadd (%p2270_p8), [#allocation12], 4294965248  ;;  %1373 = vmatprep.subr.mxu1 %v644_v0  ;;  %v641_v3 = vld [vmem:[%s2084_s12 + $0x60] sm:$0xff]  ;;  %v640_v5 = vld [vmem:[%s2084_s12 + $0x58] sm:$0xff]  ;;  %s1022_s19 = sshll.u32 %s514_s8, 4  ;;  %s1275_s15 = sshll.u32 %s1806_s30, 8  ;;  %s2165_s19 = int_to_ptr.vmem [resolvable:$true] %s1022_s19 }
  0x92   : > { %1374 = vmatpush3.msra.mxu1 %v644_v0  ;;  %v627_v4 = vld [vmem:[%s2076_s14] sm:$0xff]  ;;  %v639_v6 = vld [vmem:[%s2084_s12 + $0x50] sm:$0xff]  ;;  %v638_v7 = vld [vmem:[%s2084_s12 + $0x48] sm:$0xff]  ;;  %s2272_s10 = sld [smem:[#allocation31_spill]]  ;;  %s1722_s16 = scalar_lea.vmem %s2165_s19, 256 }
  0x93   : > { %1375 = vmatprep.subr.mxu1 %v643_v1  ;;  %1405 = vmatprep.mubr.f32.mxu1 %v627_v4  ;;  %v637_v8 = vld [vmem:[%s2084_s12 + $0x40] sm:$0xff]  ;;  %v534_v10 = vld [vmem:[#allocation11 + $0x70] sm:$0xff]  ;;  %v533_v12 = vld [vmem:[#allocation11 + $0x68] sm:$0xff]  ;;  %p1723_p5 = scmp.ne.s32.totalorder %s2165_s19, %s1722_s16  ;;  %p2274_p12 = scmp.ne.s32.totalorder %s2259_s1, 0 }
  0x94   : > { %1376 = vmatpush3.msra.mxu1 %v643_v1  ;;  %v535_v9 = vld [vmem:[#allocation11 + $0x78] sm:$0xff]  ;;  %v635_v13 = vld [vmem:[%s2084_s12 + $0x30] sm:$0xff]  ;;  %v532_v14 = vld [vmem:[#allocation11 + $0x60] sm:$0xff]  ;;  %s1826_s30 = smov [#allocation13]  }
  0x95   : > { %1377 = vmatprep.subr.mxu1 %v642_v2  ;;  %1338 = vmatprep.subr.mxu0 %v535_v9  ;;  %v636_v11 = vld [vmem:[%s2084_s12 + $0x38] sm:$0xff]  ;;  %v634_v15 = vld [vmem:[%s2084_s12 + $0x28] sm:$0xff]  ;;  %v633_v17 = vld [vmem:[%s2084_s12 + $0x20] sm:$0xff]  ;;  %p1724_p13 = pnand %p1723_p5, %p2274_p12  ;;  %s1726_s17 = sshll.u32 %s1826_s30, 4  ;;  %s1727_s17 = int_to_ptr.vmem [resolvable:$false] %s1726_s17 }
  0x96   : > { %1378 = vmatpush3.msra.mxu1 %v642_v2  ;;  %1339 = vmatpush3.msra.mxu0 %v535_v9  ;;  %v531_v16 = vld [vmem:[#allocation11 + $0x58] sm:$0xff]  ;;  %v530_v18 = vld [vmem:[#allocation11 + $0x50] sm:$0xff]  ;;  %v529_v20 = vld [vmem:[#allocation11 + $0x48] sm:$0xff]  ;;  %s1728_s26 = scalar_lea.vmem %s1727_s17, 512  ;;  %p1729_p4 = scmp.lt.s32.totalorder %s2165_s19, %s1727_s17 }
  0x97   : > { %1379 = vmatprep.subr.mxu1 %v641_v3  ;;  %1340 = vmatprep.subr.mxu0 %v534_v10  ;;  %v632_v19 = vld [vmem:[%s2084_s12 + $0x18] sm:$0xff]  ;;  %v631_v21 = vld [vmem:[%s2084_s12 + $0x10] sm:$0xff]  ;;  %v528_v22 = vld [vmem:[#allocation11 + $0x40] sm:$0xff]  ;;  %p1725_p3 = pneg %p1724_p13  ;;  %p1730_p10 = scmp.lt.s32.totalorder %s1728_s26, %s1722_s16 }
  0x98   : > { %1380 = vmatpush3.msra.mxu1 %v641_v3  ;;  %1341 = vmatpush3.msra.mxu0 %v534_v10  ;;  %v630_v23 = vld [vmem:[%s2084_s12 + $0x8] sm:$0xff]  ;;  %v527_v24 = vld [vmem:[#allocation11 + $0x38] sm:$0xff]  ;;  %v526_v26 = vld [vmem:[#allocation11 + $0x30] sm:$0xff]  ;;  %s2273_s2 = smov %s2272_s10  ;;  %s2170_s5 = scalar_lea.hbm %s2272_s10, %s1275_s15 }
  0x99   : > { %1381 = vmatprep.subr.mxu1 %v640_v5  ;;  %1342 = vmatprep.subr.mxu0 %v533_v12  ;;  %v629_v25 = vld [vmem:[%s2084_s12] sm:$0xff]  ;;  %v628_v27 = vld [vmem:[%s2076_s14 + $0x8] sm:$0xff]  ;;  %v1258_v28 = vld [vmem:[%s2084_s12 + $0xf8] sm:$0xff]  ;;  %p1731_p9 = por %p1730_p10, %p1729_p4 }
  0x9a   : > { %1382 = vmatpush3.msra.mxu1 %v640_v5  ;;  %1343 = vmatpush3.msra.mxu0 %v533_v12  ;;  %v1241_v29 = vld [vmem:[%s2076_s14 + $0x10] sm:$0xff]  ;;  %v1256_v32 = vld [vmem:[%s2084_s12 + $0xe8] sm:$0xff]  ;;  %v1255_v34 = vld [vmem:[%s2084_s12 + $0xe0] sm:$0xff] }
  0x9b   : > { %1383 = vmatprep.subr.mxu1 %v639_v6  ;;  %1344 = vmatprep.subr.mxu0 %v532_v14  ;;  %v1257_v30 = vld [vmem:[%s2084_s12 + $0xf0] sm:$0xff]  ;;  %v524_v33 = vld [vmem:[#allocation11 + $0x20] sm:$0xff]  ;;  %v523_v35 = vld [vmem:[#allocation11 + $0x18] sm:$0xff]  ;;  %p1732_p6 = pnand %p1731_p9, %p1725_p3 }
  0x9c   : > { %1384 = vmatpush3.msra.mxu1 %v639_v6  ;;  %1345 = vmatpush3.msra.mxu0 %v532_v14  ;;  %v525_v31 = vld [vmem:[#allocation11 + $0x28] sm:$0xff]  ;;  %v1254_v36 = vld [vmem:[%s2084_s12 + $0xd8] sm:$0xff]  ;;  %v1251_v41 = vld [vmem:[%s2084_s12 + $0xc0] sm:$0xff] }
  0x9d   : > { %1385 = vmatprep.subr.mxu1 %v638_v7  ;;  %1346 = vmatprep.subr.mxu0 %v531_v16  ;;  %v522_v37 = vld [vmem:[#allocation11 + $0x10] sm:$0xff]  ;;  %v521_v39 = vld [vmem:[#allocation11 + $0x8] sm:$0xff]  ;;  %v1247_v45 = vld [vmem:[%s2084_s12 + $0xa0] sm:$0xff] }
  0x9e   : > { %1386 = vmatpush3.msra.mxu1 %v638_v7  ;;  %1347 = vmatpush3.msra.mxu0 %v531_v16  ;;  %v1253_v38 = vld [vmem:[%s2084_s12 + $0xd0] sm:$0xff]  ;;  %v1252_v40 = vld [vmem:[%s2084_s12 + $0xc8] sm:$0xff]  ;;  %v1250_v42 = vld [vmem:[%s2084_s12 + $0xb8] sm:$0xff] }
  0x9f   : > { %1387 = vmatprep.subr.mxu1 %v637_v8  ;;  %1348 = vmatprep.subr.mxu0 %v530_v18  ;;  %v1249_v43 = vld [vmem:[%s2084_s12 + $0xb0] sm:$0xff]  ;;  %v1248_v44 = vld [vmem:[%s2084_s12 + $0xa8] sm:$0xff]  ;;  %v1246_v46 = vld [vmem:[%s2084_s12 + $0x98] sm:$0xff] }
  0xa0   : > { %1388 = vmatpush3.msra.mxu1 %v637_v8  ;;  %1349 = vmatpush3.msra.mxu0 %v530_v18  ;;  %v1245_v47 = vld [vmem:[%s2084_s12 + $0x90] sm:$0xff]  ;;  %v1244_v48 = vld [vmem:[%s2084_s12 + $0x88] sm:$0xff]  ;;  %v1243_v49 = vld [vmem:[%s2084_s12 + $0x80] sm:$0xff] }
  0xa1   : > { %1389 = vmatprep.subr.mxu1 %v636_v11  ;;  %1350 = vmatprep.subr.mxu0 %v529_v20  ;;  %v1242_v50 = vld [vmem:[%s2076_s14 + $0x18] sm:$0xff]  ;;  %v520_v51 = vld [vmem:[#allocation11] sm:$0xff]  ;;  %v1238_v55 = vld [vmem:[%s2091_s25] ss:$0 sm:$0xff]  ;;  %s1007_s14 = scalar_lea.sflag [#allocation4], %s2072_s0 }
  0xa2   : > { %1390 = vmatpush3.msra.mxu1 %v636_v11  ;;  %1351 = vmatpush3.msra.mxu0 %v529_v20  ;;  %v518_v52 = vld [vmem:[%s2102_s3] sm:$0xff]  ;;  %v519_v53 = vld [vmem:[%s2102_s3 + $0x8] sm:$0xff] }
  0xa3   : > { %1391 = vmatprep.subr.mxu1 %v635_v13  ;;  %1352 = vmatprep.subr.mxu0 %v528_v22  ;;  %v727_v54 = vld [vmem:[%s2093_s24] sm:$0xff]  ;;  %v728_v60 = vld [vmem:[%s2093_s24 + $0x8] sm:$0xff]  ;;  %v1261_v61 = vld [vmem:[%s2093_s24 + $0x10] sm:$0xff] }
  0xa4   : > { %1392 = vmatpush3.msra.mxu1 %v635_v13  ;;  %1353 = vmatpush3.msra.mxu0 %v528_v22  ;;  %v1260_v62 = vld [vmem:[%s2091_s25 + $0x1] ss:$0 sm:$0xff]  ;;  %v1236_v5 = vld [vmem:[%s2224_s6] ss:$0 sm:$0xff] }
  0xa5   : > { %1393 = vmatprep.subr.mxu1 %v634_v15  ;;  %1354 = vmatprep.subr.mxu0 %v527_v24  ;;  %v1262_v3 = vld [vmem:[%s2093_s24 + $0x18] sm:$0xff] }
  0xa6   : > { %1394 = vmatpush3.msra.mxu1 %v634_v15  ;;  %1355 = vmatpush3.msra.mxu0 %v527_v24  ;;  %v1237_v8 = vld [vmem:[%s2271_s22] ss:$0 sm:$0xff] }
  0xa7   : > { %1395 = vmatprep.subr.mxu1 %v633_v17  ;;  %1356 = vmatprep.subr.mxu0 %v526_v26 }
  0xa8   : > { %1396 = vmatpush3.msra.mxu1 %v633_v17  ;;  %1357 = vmatpush3.msra.mxu0 %v526_v26 }
  0xa9   : > { %1397 = vmatprep.subr.mxu1 %v632_v19  ;;  %1358 = vmatprep.subr.mxu0 %v525_v31 }
  0xaa   : > { %1398 = vmatpush3.msra.mxu1 %v632_v19  ;;  %1359 = vmatpush3.msra.mxu0 %v525_v31 }
  0xab   : > { %1399 = vmatprep.subr.mxu1 %v631_v21  ;;  %1360 = vmatprep.subr.mxu0 %v524_v33 }
  0xac   : > { %1400 = vmatpush3.msra.mxu1 %v631_v21  ;;  %1361 = vmatpush3.msra.mxu0 %v524_v33 }
  0xad   : > { %1401 = vmatprep.subr.mxu1 %v630_v23  ;;  %1362 = vmatprep.subr.mxu0 %v523_v35 }
  0xae   : > { %1402 = vmatpush3.msra.mxu1 %v630_v23  ;;  %1363 = vmatpush3.msra.mxu0 %v523_v35 }
  0xaf   : > { %1403 = vmatprep.subr.mxu1 %v629_v25  ;;  %1364 = vmatprep.subr.mxu0 %v522_v37 }
  0xb0   : > { %1404 = vmatpush3.msra.mxu1 %v629_v25  ;;  %1365 = vmatpush3.msra.mxu0 %v522_v37 }
  0xb1   : > { %1406 = vmatmul.mubr.f32.vlgmr.msra.gmra.mxu1 %v628_v27  ;;  %1415 = vmatprep.subr.mxu1 %v1258_v28 }
  0xb2   : > { %1416 = vmatpush3.msra.mxu1 %v1258_v28  ;;  %1447 = vmatprep.mubr.f32.mxu1 %v1241_v29 }
  0xb3   : > { %1417 = vmatprep.subr.mxu1 %v1257_v30  ;;  %1366 = vmatprep.subr.mxu0 %v521_v39 }
  0xb4   : > { %1418 = vmatpush3.msra.mxu1 %v1257_v30  ;;  %1367 = vmatpush3.msra.mxu0 %v521_v39 }
  0xb5   : > { %1419 = vmatprep.subr.mxu1 %v1256_v32  ;;  %1368 = vmatprep.subr.mxu0 %v520_v51 }
  0xb6   : > { %1420 = vmatpush3.msra.mxu1 %v1256_v32  ;;  %1369 = vmatpush3.msra.mxu0 %v520_v51 }
  0xb7   : > { %1421 = vmatprep.subr.mxu1 %v1255_v34  ;;  %1370 = vmatprep.mubr.f32.mxu0 %v518_v52 }
  0xb8   : > { %1422 = vmatpush3.msra.mxu1 %v1255_v34  ;;  %1371 = vmatmul.mubr.f32.vlgmr.msra.gmra.mxu0 %v519_v53 }
  0xb9   : > { %1423 = vmatprep.subr.mxu1 %v1254_v36  ;;  %1412 = vmatprep.mubr.msk.f32.mxu0 %vm729_vm0, %v727_v54 }
  0xba   : > { %1424 = vmatpush3.msra.mxu1 %v1254_v36 }
  0xbb   : > { %1425 = vmatprep.subr.mxu1 %v1253_v38 }
  0xbc   : > { %1426 = vmatpush3.msra.mxu1 %v1253_v38 }
  0xbd   : > { %1427 = vmatprep.subr.mxu1 %v1252_v40 }
  0xbe   : > { %1428 = vmatpush3.msra.mxu1 %v1252_v40 }
  0xbf   : > { %1429 = vmatprep.subr.mxu1 %v1251_v41 }
  0xc0   : > { %1430 = vmatpush3.msra.mxu1 %v1251_v41 }
  0xc1   : > { %1431 = vmatprep.subr.mxu1 %v1250_v42 }
  0xc2   : > { %1432 = vmatpush3.msra.mxu1 %v1250_v42 }
  0xc3   : > { %1433 = vmatprep.subr.mxu1 %v1249_v43 }
  0xc4   : > { %1434 = vmatpush3.msra.mxu1 %v1249_v43 }
  0xc5   : > { %1435 = vmatprep.subr.mxu1 %v1248_v44 }
  0xc6   : > { %1436 = vmatpush3.msra.mxu1 %v1248_v44 }
  0xc7   : > { %1437 = vmatprep.subr.mxu1 %v1247_v45 }
  0xc8   : > { %1438 = vmatpush3.msra.mxu1 %v1247_v45 }
  0xc9   : > { %1439 = vmatprep.subr.mxu1 %v1246_v46 }
  0xca   : > { %1440 = vmatpush3.msra.mxu1 %v1246_v46 }
  0xcb   : > { %1441 = vmatprep.subr.mxu1 %v1245_v47 }
  0xcc   : > { %1442 = vmatpush3.msra.mxu1 %v1245_v47 }
  0xcd   : > { %1443 = vmatprep.subr.mxu1 %v1244_v48 }
  0xce   : > { %1444 = vmatpush3.msra.mxu1 %v1244_v48 }
  0xcf   : > { %1445 = vmatprep.subr.mxu1 %v1243_v49 }
  0xd0   : > { %1446 = vmatpush3.msra.mxu1 %v1243_v49 }
  0xd1   : > { %1448 = vmatmul.mubr.f32.vlgmr.msra.gmra.mxu1 %v1242_v50 }
 0x171   : > { %v1407_v56 = vpop.f32.mrf.mxu1 }
 0x172   : > { %v724_v57 = vadd.f32 %v1407_v56, %v1238_v55 }
 0x173   : > { %v718_v58 = vpop.f32.mrf.mxu1 }
 0x174   : > { %v719_v59 = vadd.f32 %v1238_v55, %v718_v58  ;;  %1408 = vmatprep.subr.mxu0 %v724_v57 }
 0x175   : > { %1409 = vmatpush3.msra.mxu0 %v724_v57 }
 0x176   : > { %1410 = vmatprep.subr.mxu0 %v719_v59 }
 0x177   : > { %1411 = vmatpush3.msra.mxu0 %v719_v59 }
 0x178   : > { %1413 = vmatmul.mubr.msk.f32.vlgmr.msra.gmra.mxu0 %vm729_vm0, %v728_v60  ;;  %v1372_v4 = vpop.f32.mrf.mxu0 }
 0x179   : > { %1454 = vmatprep.mubr.msk.f32.mxu0 %vm729_vm0, %v1261_v61  ;;  %v615_v7 = vadd.f32 %v1372_v4, %v1236_v5 }
 0x17a   : > { %v609_v6 = vpop.f32.mrf.mxu0 }
 0x17b   : > { %v610_v9 = vadd.f32 %v1236_v5, %v609_v6  ;;  %v626_v11 = vadd.f32 %v1237_v8, %v615_v7 }
 0x17d   : > { %v625_v12 = vadd.f32 %v1237_v8, %v610_v9 }
 0x191   : > { %v1449_v63 = vpop.f32.mrf.mxu1 }
 0x192   : > { %v913_v0 = vadd.f32 %v1449_v63, %v1260_v62 }
 0x193   : > { %v907_v1 = vpop.f32.mrf.mxu1 }
 0x194   : > { %v908_v2 = vadd.f32 %v1260_v62, %v907_v1  ;;  %1450 = vmatprep.subr.mxu0 %v913_v0 }
 0x195   : > { %1451 = vmatpush3.msra.mxu0 %v913_v0 }
 0x196   : > { %1452 = vmatprep.subr.mxu0 %v908_v2 }
 0x197   : > { %1453 = vmatpush3.msra.mxu0 %v908_v2 }
 0x198   : > { %1455 = vmatmul.mubr.msk.f32.vlgmr.msra.gmra.mxu0 %vm729_vm0, %v1262_v3 }
 0x238   : > { %v1414_v10 = vpop.f32.mrf.mxu0 }
 0x239   : > { %v812_v14 = vadd.f32 %v1414_v10, %v626_v11 }
 0x23a   : > { %v802_v13 = vpop.f32.mrf.mxu0 }
 0x23b   : > { %v811_v16 = vadd.f32 %v802_v13, %v625_v12 }
 0x258   : > { %v1456_v15 = vpop.f32.mrf.mxu0 }
 0x259   : > { %v1001_v17 = vadd.f32 %v1456_v15, %v812_v14 }
 0x25a   : > { %v991_v18 = vpop.f32.mrf.mxu0 }
 0x25b   : > { %v1003_v19 = vadd.f32 %v1001_v17, %v519_v53  ;;  %v1000_v20 = vadd.f32 %v991_v18, %v811_v16 }
 0x25d   : > { %1005 = vst [vmem:[%s514_s8 + $0x8] sm:$0xff] %v1003_v19  ;;  %v1002_v21 = vadd.f32 %v1000_v20, %v518_v52 }
 0x25f   : > { %1004 = vst [vmem:[%s514_s8] sm:$0xff] %v1002_v21 }
 0x260   : > { %1735 = shalt.err (!%p1732_p6)
}
 0x261   : > { %s1736_s12 = scalar_lea.hbm %s2170_s5, 256  ;;  %s1740_s21 = scalar_lea.hbm %s2273_s2, 512 }
 0x262   : > { %p1737_p0 = scmp.ne.s32.totalorder %s2170_s5, %s1736_s12  ;;  %p1741_p2 = scmp.lt.s32.totalorder %s2170_s5, %s2273_s2 }
 0x263   : > { %p1742_p7 = scmp.lt.s32.totalorder %s1740_s21, %s1736_s12 }
 0x264   : > { %p1738_p11 = pnand %p1737_p0, %p2274_p12 }
 0x265   : > { %p1743_p8 = por %p1742_p7, %p1741_p2 }
 0x266   : > { %p1739_p1 = pneg %p1738_p11 }
 0x268   : > { %p1744_p5 = pnand %p1743_p8, %p1739_p1 }
 0x26a   : > { %1747 = shalt.err (!%p1744_p5)
}
 0x26b   : > { %s1827_s3 = smov 128   ;;  %s1828_s7 = smov 8  }
 0x26c   : > { %1471 = dma.vmem_to_hbm [thread:$0]  (%p2274_p12), %s2165_s19, 256, %s2170_s5, %s1007_s14, %s1827_s3, %s1827_s3, %s1828_s7  }
 0x26d PF: > { %s2275_s11 = sld [smem:[#allocation19_spill]] }
 0x26e   : > { %s2276_s18 = sld [smem:[#allocation24_spill]] }
 0x26f   : > { %s2277_s23 = sld [smem:[#allocation21_spill]] }
 0x273   : > { %s1037_s22 = sand.u32 1, %s2275_s11  }
 0x274   : > { %p2278_p13 = scmp.ne.s32.totalorder %s2276_s18, 0  ;;  %s1038_s8 = scalar_lea.sflag [#allocation4], %s1037_s22 }
 0x275   : > { %p2279_p3 = scmp.ge.s32.totalorder %s2277_s23, 2 }
 0x277   : > { %p1494_p4 = pnand %p2279_p3, %p2278_p13 }
 0x279   : > { %p1495_p10 = pneg %p1494_p4 }
 0x27b   : > { %1789 = dma.done.wait (%p1495_p10), %s1038_s8, 256  }
 0x27c   : > { %1791 = vsyncadd (%p1495_p10), %s1038_s8, 4294967040  ;;  %s31_s10 = sadd.s32 1, %s2277_s23   ;;  %s2280_s15 = sld [smem:[#allocation20_spill]] }
 0x27d   : > { %p28_p9 = scmp.ge.s32.totalorder %s31_s10, 4   ;;  %s2281_s29 = sld [smem:[#allocation23_spill]] }
 0x27e   : > { %s2282_s1 = sld [smem:[#allocation22_spill]]  ;;  %s2283_s27 = smov %s1798_s28 }
 0x27f   : > { %s2285_s30 = smov %s1810_s9 }
 0x280   :  { %30 = sbr.rel (!%p28_p9) target bundleno = 19 (0x13), region = 153 }
 0x282   : > { %s2284_s28 = smov %s2280_s15 }
 0x284   : > { %s2286_s9 = smov %s2282_s1 }
 0x285   :  { %1043 = vsyncpa [#allocation3], 1 }
 0x286   :  { %1045 = vsyncpa [#allocation3 + $0x1], 1 }
 0x287   :  { %1046 = vsyncpa [#allocation6], 1 }
 0x288   :  { %1048 = vsyncpa [#allocation6 + $0x1], 1 }
 0x289   :  { %1049 = vsyncpa [#allocation9], 1 }
 0x28a   :  { %1051 = vsyncpa [#allocation9 + $0x1], 1 }
 0x28b   :  { %1052 = vsyncpa [#allocation12], 1 }
 0x28c   :  { %1053 = vsyncpa [#allocation4], 1 }
 0x28d   :  { %1055 = vsyncpa [#allocation4 + $0x1], 1 }

</bundles_post_ra>
